<compile_context>
chip_gen: v7x
topology: tpu7x:2x2x1
jax: 0.10.0
libtpu: 0.0.40
codegen_flags: <defaults>
</compile_context>

<pallas_src>
import functools

import jax
import jax.numpy as jnp
from jax.experimental import pallas as pl
from jax.experimental.pallas import tpu as pltpu


def _round_up(x, m):
    return ((x + m - 1) // m) * m


def _vmem_capacity_bytes():
    """Physical per-core VMEM; conservative 64 MiB (v7x) fallback."""
    try:
        return int(pltpu.get_tpu_info().vmem_capacity_bytes)
    except Exception:
        return 64 << 20


# ---------------------------------------------------------------------------
# Kernels
# ---------------------------------------------------------------------------
def _kernel_fused(x_ref, w_ref, b_ref, o_ref):
    """Single N tile (tn == Hp):  o = x + x @ W + b."""
    x = x_ref[...]                                            # (tm, Hp)
    y = jnp.dot(x.astype(w_ref.dtype), w_ref[...],            # MXU matmul
                preferred_element_type=jnp.float32)           # f32 accumulate
    o_ref[...] = (x.astype(jnp.float32) + y + b_ref[...]).astype(o_ref.dtype)


def _kernel_ntiled(x_ref, w_ref, b_ref, o_ref, *, tn):
    """N-tiled weight; residual sliced from the resident LHS tile.

    o[:, j*tn:(j+1)*tn] = x[:, j*tn:(j+1)*tn] + x @ W[:, j*tn:(j+1)*tn] + b_j
    """
    j = pl.program_id(0)
    y = jnp.dot(x_ref[...], w_ref[...],
                preferred_element_type=jnp.float32)           # (tm, tn) f32
    off = pl.multiple_of(j * tn, 128)                         # aligned lane slice
    xr = x_ref[:, pl.ds(off, tn)]                             # no extra HBM read
    o_ref[...] = (xr.astype(jnp.float32) + y + b_ref[...]).astype(o_ref.dtype)


def _kernel_ntiled_res(x_ref, xr_ref, w_ref, b_ref, o_ref):
    """N-tiled weight with a separate full-precision residual input.

    Used only when the LHS was pre-cast to a lower matmul dtype (opt-in bf16
    on f32 inputs) so the residual add stays in the original dtype.
    """
    y = jnp.dot(x_ref[...], w_ref[...],
                preferred_element_type=jnp.float32)
    o_ref[...] = (xr_ref[...].astype(jnp.float32) + y + b_ref[...]
                  ).astype(o_ref.dtype)


# ---------------------------------------------------------------------------
# Wrapper
# ---------------------------------------------------------------------------
def residual_linear(x, w, b, *, tm=None, tn=512, use_bf16_matmul=None):
    """Residual(Linear): x + x @ w + b over the last axis of x.

    x: [B, S, H]; w: [H, H] ([in, out]); b: [H].
    tm: row tile (auto-sized from the VMEM budget when None).
    tn: output-hidden tile (multiple of 128).
    use_bf16_matmul: None => dtype-driven (bf16 only if x is bf16);
                     True => force bf16 MXU operands; False => keep x.dtype.
    """
    B, S, H = x.shape
    M = B * S
    out_dtype = x.dtype

    # ---- matmul dtype (dtype-driven; bf16 down-cast of f32 is opt-in) ----
    if use_bf16_matmul is None:
        mm_dtype = jnp.dtype(jnp.bfloat16) if x.dtype == jnp.bfloat16 \
            else jnp.dtype(x.dtype)
    elif use_bf16_matmul:
        mm_dtype = jnp.dtype(jnp.bfloat16)
    else:
        mm_dtype = jnp.dtype(x.dtype)
    lhs_precast = (mm_dtype != jnp.dtype(x.dtype))

    x_bytes = jnp.dtype(x.dtype).itemsize
    w_bytes = mm_dtype.itemsize
    o_bytes = jnp.dtype(out_dtype).itemsize
    lhs_bytes = w_bytes if lhs_precast else x_bytes

    # ---- lane-dense hidden dim & N tile ----
    tn = max(128, (int(tn) // 128) * 128)
    H128 = _round_up(H, 128)
    if H128 <= tn:
        tn_eff, Hp = H128, H128                     # single fused N tile
    else:
        # Keep the MXU (256-wide on v6e/v7x) fully fed: pad Hp up to a multiple
        # of the tile instead of collapsing tn to a small divisor of Hp.
        tn_eff = (tn // 256) * 256 if tn >= 256 else tn
        Hp = _round_up(H128, tn_eff)
    n_tiles = Hp // tn_eff
    has_res_input = lhs_precast and n_tiles > 1

    # ---- row tile from the real VMEM budget (no fixed 64 MiB cap) ----
    vmem_cap = _vmem_capacity_bytes()
    budget = int(0.7 * vmem_cap)

    def tile_bytes(tm_e, w_bufs):
        need = 2 * tm_e * Hp * lhs_bytes                        # LHS x (dbl-buf)
        need += w_bufs * (Hp * tn_eff * w_bytes + tn_eff * 4)   # W + bias
        need += 2 * tm_e * tn_eff * o_bytes                     # output tile
        if has_res_input:
            need += 2 * tm_e * tn_eff * x_bytes                 # residual tile
        return need

    tm_cap = min(1024, _round_up(M, 8))
    if tm is not None:
        tm_eff = min(max(8, _round_up(int(tm), 8)), tm_cap)
    else:
        tm_eff = tm_cap
        floor = min(128, tm_cap)
        while tm_eff > floor and tile_bytes(tm_eff, 2) > budget:
            tm_eff = max(floor, _round_up(tm_eff // 2, 8))

    # Single-buffer the (inner-axis-invariant) W/bias only under real VMEM
    # pressure; on 128 MiB chips (v5e/v6e) they stay double-buffered.
    single_buffer_w = tile_bytes(tm_eff, 2) > budget
    if single_buffer_w:
        while tm_eff > 8 and tile_bytes(tm_eff, 1) > budget:
            tm_eff = max(8, _round_up(tm_eff // 2, 8))
        # TODO(synk): if even w_bufs=1 does not fit (huge Hp on v7x), K-tile
        # the contraction with an f32 accumulator scratch instead.
    w_bufs = 1 if single_buffer_w else 2
    vmem_need = tile_bytes(tm_eff, w_bufs)
    m_tiles = pl.cdiv(M, tm_eff)

    # ---- operands: pad lanes only when needed; never pad/slice rows ----
    x2d = x.reshape(M, H)
    if Hp != H:
        x2d = jnp.pad(x2d, ((0, 0), (0, Hp - H)))
        w_p = jnp.pad(w, ((0, Hp - H), (0, Hp - H)))
        b_p = jnp.pad(b, (0, Hp - H))
    else:
        w_p, b_p = w, b
    w_mm = w_p.astype(mm_dtype)                  # cast once, outside the kernel
    b_p = b_p.reshape(1, Hp).astype(jnp.float32)

    w_kw = {"pipeline_mode": pl.Buffered(1)} if single_buffer_w else {}

    if n_tiles == 1:
        kernel = _kernel_fused
        operands = (x2d, w_mm, b_p)
        grid = (m_tiles,)
        dim_sem = ("parallel",)
        in_specs = [
            pl.BlockSpec((tm_eff, Hp), lambda i: (i, 0)),              # x
            pl.BlockSpec((Hp, Hp), lambda i: (0, 0), **w_kw),          # W
            pl.BlockSpec((1, Hp), lambda i: (0, 0), **w_kw),           # b
        ]
        out_spec = pl.BlockSpec((tm_eff, Hp), lambda i: (i, 0))
    else:
        grid = (n_tiles, m_tiles)            # N outer, rows inner: W/bias block
        dim_sem = ("parallel", "parallel")   # invariant across the inner steps
        if not has_res_input:
            kernel = functools.partial(_kernel_ntiled, tn=tn_eff)
            operands = (x2d, w_mm, b_p)
            in_specs = [
                pl.BlockSpec((tm_eff, Hp), lambda j, i: (i, 0)),           # x
                pl.BlockSpec((Hp, tn_eff), lambda j, i: (0, j), **w_kw),   # W
                pl.BlockSpec((1, tn_eff), lambda j, i: (0, j), **w_kw),    # b
            ]
        else:
            # Explicit low-precision matmul on higher-precision inputs: stream
            # the re-read LHS in mm_dtype, carry the residual at full dtype.
            kernel = _kernel_ntiled_res
            operands = (x2d.astype(mm_dtype), x2d, w_mm, b_p)
            in_specs = [
                pl.BlockSpec((tm_eff, Hp), lambda j, i: (i, 0)),           # LHS
                pl.BlockSpec((tm_eff, tn_eff), lambda j, i: (i, j)),       # res
                pl.BlockSpec((Hp, tn_eff), lambda j, i: (0, j), **w_kw),   # W
                pl.BlockSpec((1, tn_eff), lambda j, i: (0, j), **w_kw),    # b
            ]
        out_spec = pl.BlockSpec((tm_eff, tn_eff), lambda j, i: (i, j))

    vmem_limit = max(int(vmem_need * 1.3) + (2 << 20), 32 << 20)
    vmem_limit = int(min(vmem_limit, vmem_cap))

    cost = pl.CostEstimate(
        flops=2 * M * Hp * Hp + 2 * M * Hp,
        transcendentals=0,
        bytes_accessed=(n_tiles * M * Hp * lhs_bytes             # LHS re-reads
                        + (M * Hp * x_bytes if has_res_input else 0)
                        + Hp * Hp * w_bytes                      # W streamed once
                        + Hp * 4
                        + M * Hp * o_bytes),
    )

    out2d = pl.pallas_call(
        kernel,
        out_shape=jax.ShapeDtypeStruct((M, Hp), out_dtype),
        grid_spec=pltpu.PrefetchScalarGridSpec(
            num_scalar_prefetch=0,
            grid=grid,
            in_specs=in_specs,
            out_specs=out_spec,
        ),
        compiler_params=pltpu.CompilerParams(
            dimension_semantics=dim_sem,
            vmem_limit_bytes=vmem_limit),
        cost_estimate=cost,
    )(*operands)

    if Hp != H:
        out2d = out2d[:, :H]
    return out2d.reshape(B, S, H)


if __name__ == "__main__":
    key = jax.random.PRNGKey(0)

    def make_inputs(k, B, S, H):
        kx, kw, kb = jax.random.split(k, 3)
        bound = 1.0 / (H ** 0.5)
        x = jax.random.normal(kx, (B, S, H), dtype=jnp.float32)
        w = jax.random.uniform(kw, (H, H), minval=-bound, maxval=bound,
                               dtype=jnp.float32)   # [in, out]
        b = jax.random.uniform(kb, (H,), minval=-bound, maxval=bound,
                               dtype=jnp.float32)
        return x, w, b

    def reference(x, w, b):
        return x + (jnp.einsum("bsh,ho->bso", x, w) + b)

    k1, k2, k3, k4 = jax.random.split(key, 4)

    # 1) Lane-dense hidden (H=128): fused single-N-tile path, f32 matmul.
    x, w, b = make_inputs(k1, 2, 8, 128)
    out = residual_linear(x, w, b)
    jax.block_until_ready(out)
    assert jnp.allclose(out, reference(x, w, b), atol=3e-2, rtol=3e-2), \
        "mismatch (fused path)"

    # 2) N-tiled weight (tn < H): residual sliced from the resident LHS tile.
    x, w, b = make_inputs(k2, 2, 8, 256)
    out = residual_linear(x, w, b, tn=128)
    jax.block_until_ready(out)
    assert jnp.allclose(out, reference(x, w, b), atol=3e-2, rtol=3e-2), \
        "mismatch (N-tiled path)"

    # 3) Ragged rows (M=26) + narrow hidden (H=32): cdiv row grid + lane pad.
    x, w, b = make_inputs(k3, 2, 13, 32)
    out = residual_linear(x, w, b)
    jax.block_until_ready(out)
    assert jnp.allclose(out, reference(x, w, b), atol=3e-2, rtol=3e-2), \
        "mismatch (ragged/padded path)"

    # 4) Opt-in bf16 matmul on f32 inputs: pre-cast LHS + separate f32 residual.
    x, w, b = make_inputs(k4, 2, 8, 256)
    out = residual_linear(x, w, b, tn=128, use_bf16_matmul=True)
    jax.block_until_ready(out)
    assert jnp.allclose(out, reference(x, w, b), atol=3e-2, rtol=3e-2), \
        "mismatch (bf16 opt-in path)"

    print("KERNEL_OK")
</pallas_src>

<mosaic_0001>
module attributes {stable_mosaic.version = 11 : i64} {
  func.func @_kernel_fused(%arg0: i32, %arg1: memref<16x128xf32, #tpu.memory_space<vmem>>, %arg2: memref<128x128xf32, #tpu.memory_space<vmem>>, %arg3: memref<1x128xf32, #tpu.memory_space<vmem>>, %arg4: memref<16x128xf32, #tpu.memory_space<vmem>>) attributes {dimension_semantics = [#tpu.dimension_semantics<parallel>], iteration_bounds = array<i64: 1>, scalar_prefetch = 0 : i64, scratch_operands = 0 : i64, tpu.core_type = #tpu.core_type<tc>, window_params = [{transform_indices = @transform_0, window_bounds = array<i64: 16, 128>}, {pipeline_mode = #tpu.pipeline_mode<synchronous>, transform_indices = @transform_1, window_bounds = array<i64: 128, 128>}, {pipeline_mode = #tpu.pipeline_mode<synchronous>, transform_indices = @transform_2, window_bounds = array<i64: 1, 128>}, {transform_indices = @transform_3, window_bounds = array<i64: 16, 128>}]} {
    %c0 = arith.constant 0 : index
    %c0_0 = arith.constant 0 : index
    %0 = vector.load %arg1[%c0, %c0_0] : memref<16x128xf32, #tpu.memory_space<vmem>>, vector<16x128xf32>
    %c0_1 = arith.constant 0 : index
    %c0_2 = arith.constant 0 : index
    %1 = vector.load %arg2[%c0_1, %c0_2] : memref<128x128xf32, #tpu.memory_space<vmem>>, vector<128x128xf32>
    %cst = arith.constant dense<0.000000e+00> : vector<16x128xf32>
    %2 = tpu.matmul %0, %1, %cst {dimension_numbers = #tpu.dot_dimension_numbers<[1], [0], [0], [1], [0, 0, 1, 1], [], []>} : vector<16x128xf32>, vector<128x128xf32>, vector<16x128xf32> -> vector<16x128xf32>
    %3 = arith.addf %0, %2 : vector<16x128xf32>
    %c0_3 = arith.constant 0 : index
    %c0_4 = arith.constant 0 : index
    %4 = vector.load %arg3[%c0_3, %c0_4] : memref<1x128xf32, #tpu.memory_space<vmem>>, vector<1x128xf32>
    %5 = vector.broadcast %4 : vector<1x128xf32> to vector<16x128xf32>
    %6 = arith.addf %3, %5 : vector<16x128xf32>
    %c0_5 = arith.constant 0 : index
    %c0_6 = arith.constant 0 : index
    %7 = vector.load %arg4[%c0_5, %c0_6] : memref<16x128xf32, #tpu.memory_space<vmem>>, vector<16x128xf32>
    tpu.vector_store %arg4[%c0_5, %c0_6], %6 {strides = array<i32>} : memref<16x128xf32, #tpu.memory_space<vmem>>, vector<16x128xf32>,
    return
  }
  func.func @transform_0(%arg0: i32) -> (i32, i32) {
    %c0_i32 = arith.constant 0 : i32
    %c0_i32_0 = arith.constant 0 : i32
    return %arg0, %c0_i32 : i32, i32
  }
  func.func @transform_1(%arg0: i32) -> (i32, i32) {
    %c0_i32 = arith.constant 0 : i32
    %c0_i32_0 = arith.constant 0 : i32
    %c0_i32_1 = arith.constant 0 : i32
    return %c0_i32, %c0_i32_0 : i32, i32
  }
  func.func @transform_2(%arg0: i32) -> (i32, i32) {
    %c0_i32 = arith.constant 0 : i32
    %c0_i32_0 = arith.constant 0 : i32
    %c0_i32_1 = arith.constant 0 : i32
    return %c0_i32, %c0_i32_0 : i32, i32
  }
  func.func @transform_3(%arg0: i32) -> (i32, i32) {
    %c0_i32 = arith.constant 0 : i32
    %c0_i32_0 = arith.constant 0 : i32
    return %arg0, %c0_i32 : i32, i32
  }
}

</mosaic_0001>

<bundles_post_ra>
// kernel: tpu_custom_call.1
= control target key start
LH: loop header
LB: loop body
LE: loop exit
PB: predicated region body
PF: predicated region fallthrough
CT: control target
= control target key end

     0   :  { %8 = vsyncpa [#allocation3], 0  ;;  %s403_s0 = inlined_call_operand.hbm [shape: f32[16,128], index: 0, kind: input, shape index: {}]   ;;  %s404_s1 = inlined_call_operand.hbm [shape: f32[128,128], index: 1, kind: input, shape index: {}]   ;;  %s405_s2 = inlined_call_operand.vmem [shape: f32[1,128], index: 2, kind: input, shape index: {}]   ;;  %s406_s3 = inlined_call_operand.hbm [shape: f32[16,128], index: 3, kind: output, shape index: {}]  }
   0x1   :  { %9 = vsyncpa [#allocation6], 0 }
   0x2   :  { %10 = vsyncpa [#allocation4], 0  ;;  %s330_s12 = smov [#allocation2]   ;;  %s258_s16 = scalar_lea.hbm %s403_s0, 256 }
   0x3   :  { %s16_s13 = sshll.u32 %s330_s12, 4  ;;  %p259_p0 = scmp.ne.s32.totalorder %s403_s0, %s258_s16  ;;  %s17_s13 = int_to_ptr.vmem [resolvable:$true] %s16_s13 }
   0x4   :  { %p262_p1 = scmp.lt.u32.totalorder %s258_s16, %s403_s0 }
   0x6   :  { %p264_p2 = pnand %p262_p1, %p259_p0 }
   0x8   :  { %267 = shalt.err (!%p264_p2)
}
   0x9   :  { %s268_s21 = scalar_lea.vmem %s17_s13, 256  ;;  %p273_p4 = scmp.lt.s32.totalorder %s17_s13, %s17_s13 }
   0xa   :  { %p269_p3 = scmp.ne.s32.totalorder %s17_s13, %s268_s21  ;;  %p274_p5 = scmp.lt.s32.totalorder %s268_s21, %s268_s21 }
   0xc   :  { %p275_p6 = por %p274_p5, %p273_p4 }
   0xe   :  { %p276_p7 = pnand %p275_p6, %p269_p3 }
  0x10   :  { %279 = shalt.err (!%p276_p7)
}
  0x11   :  { %s331_s22 = smov 128   ;;  %s332_s23 = smov 8  }
  0x12   :  { %22 = dma.hbm_to_vmem [thread:$0]  %s403_s0, 256, %s17_s13, [#allocation3], %s331_s22, %s331_s22, %s332_s23  }
  0x13   :  { %s333_s26 = smov [#allocation5]   ;;  %s280_s30 = scalar_lea.hbm %s404_s1, 2048 }
  0x14   :  { %s28_s27 = sshll.u32 %s333_s26, 4  ;;  %p281_p8 = scmp.ne.s32.totalorder %s404_s1, %s280_s30  ;;  %s29_s27 = int_to_ptr.vmem [resolvable:$true] %s28_s27 }
  0x15   :  { %p284_p9 = scmp.lt.u32.totalorder %s280_s30, %s404_s1 }
  0x17   :  { %p286_p10 = pnand %p284_p9, %p281_p8 }
  0x19   :  { %289 = shalt.err (!%p286_p10)
}
  0x1a   :  { %s290_s8 = scalar_lea.vmem %s29_s27, 2048  ;;  %p295_p12 = scmp.lt.s32.totalorder %s29_s27, %s29_s27 }
  0x1b   :  { %p291_p11 = scmp.ne.s32.totalorder %s29_s27, %s290_s8  ;;  %p296_p13 = scmp.lt.s32.totalorder %s290_s8, %s290_s8 }
  0x1d   :  { %p297_p0 = por %p296_p13, %p295_p12 }
  0x1f   :  { %p298_p1 = pnand %p297_p0, %p291_p11 }
  0x21   :  { %301 = shalt.err (!%p298_p1)
}
  0x22   :  { %34 = dma.hbm_to_vmem [thread:$0]  %s404_s1, 2048, %s29_s27, [#allocation6], %s331_s22, %s331_s22, %s332_s23  }
  0x23   :  { %324 = dma.done.wait [#allocation3], 256  }
  0x24   :  { %325 = vsyncadd [#allocation3], 4294967040 }
  0x25   :  { %326 = dma.done.wait [#allocation6], 2048  }
  0x26   :  { %327 = vsyncadd [#allocation6], 4294965248  ;;  %v45_v0 = vld [vmem:[#allocation5] sm:$0xff]  ;;  %v46_v1 = vld [vmem:[#allocation5 + $0x8] sm:$0xff]  ;;  %s334_s11 = smov [#allocation7]  }
  0x27   :  { %v47_v2 = vld [vmem:[#allocation5 + $0x10] sm:$0xff]  ;;  %v221_v3 = vpack.c.bf16 %v46_v1, %v45_v0  ;;  %v48_v4 = vld [vmem:[#allocation5 + $0x18] sm:$0xff]  ;;  %v49_v6 = vld [vmem:[#allocation5 + $0x20] sm:$0xff]  ;;  %s154_s12 = sshll.u32 %s334_s11, 4  ;;  %s155_s12 = int_to_ptr.vmem [resolvable:$true] %s154_s12 }
  0x28   :  { %v225_v5 = vpack.c.bf16 %v48_v4, %v47_v2  ;;  %v50_v7 = vld [vmem:[#allocation5 + $0x28] sm:$0xff]  ;;  %v43_v9 = vld [vmem:[#allocation2] sm:$0xff]  ;;  %v52_v11 = vld [vmem:[#allocation5 + $0x38] sm:$0xff]  ;;  %s302_s13 = scalar_lea.vmem %s155_s12, 256  ;;  %p307_p3 = scmp.lt.s32.totalorder %s155_s12, %s155_s12 }
  0x29   :  { %222 = vmatprep.subr.bf16.mxu0 %v221_v3  ;;  %v229_v8 = vpack.c.bf16 %v50_v7, %v49_v6  ;;  %v51_v10 = vld [vmem:[#allocation5 + $0x30] sm:$0xff]  ;;  %218 = vmatprep.mubr.f32.mxu0 %v43_v9  ;;  %v53_v13 = vld [vmem:[#allocation5 + $0x40] sm:$0xff]  ;;  %v54_v14 = vld [vmem:[#allocation5 + $0x48] sm:$0xff]  ;;  %p303_p2 = scmp.ne.s32.totalorder %s155_s12, %s302_s13  ;;  %p308_p4 = scmp.lt.s32.totalorder %s302_s13, %s302_s13 }
  0x2a   :  { %224 = vmatpush3.bf16.msra.mxu0 %v221_v3  ;;  %v233_v12 = vpack.c.bf16 %v52_v11, %v51_v10  ;;  %v237_v15 = vpack.c.bf16 %v54_v14, %v53_v13  ;;  %v55_v16 = vld [vmem:[#allocation5 + $0x50] sm:$0xff]  ;;  %v56_v17 = vld [vmem:[#allocation5 + $0x58] sm:$0xff]  ;;  %v57_v19 = vld [vmem:[#allocation5 + $0x60] sm:$0xff] }
  0x2b   :  { %226 = vmatprep.subr.bf16.mxu0 %v225_v5  ;;  %v241_v18 = vpack.c.bf16 %v56_v17, %v55_v16  ;;  %v58_v20 = vld [vmem:[#allocation5 + $0x68] sm:$0xff]  ;;  %v59_v22 = vld [vmem:[#allocation5 + $0x70] sm:$0xff]  ;;  %v60_v23 = vld [vmem:[#allocation5 + $0x78] sm:$0xff]  ;;  %p309_p5 = por %p308_p4, %p307_p3 }
  0x2c   :  { %v245_v21 = vpack.c.bf16 %v58_v20, %v57_v19  ;;  %v249_v24 = vpack.c.bf16 %v60_v23, %v59_v22  ;;  %v44_v25 = vld [vmem:[#allocation2 + $0x8] sm:$0xff]  ;;  %v167_v27 = vld [vmem:[%s405_s2] ss:$0 sm:$0xff] }
  0x2d   :  { %p310_p6 = pnand %p309_p5, %p303_p2 }
  0x2e   :  { %228 = vmatpush3.bf16.msra.mxu0 %v225_v5 }
  0x2f   :  { %230 = vmatprep.subr.bf16.mxu0 %v229_v8 }
  0x32   :  { %232 = vmatpush3.bf16.msra.mxu0 %v229_v8 }
  0x33   :  { %234 = vmatprep.subr.bf16.mxu0 %v233_v12 }
  0x36   :  { %236 = vmatpush3.bf16.msra.mxu0 %v233_v12 }
  0x37   :  { %238 = vmatprep.subr.bf16.mxu0 %v237_v15 }
  0x3a   :  { %240 = vmatpush3.bf16.msra.mxu0 %v237_v15 }
  0x3b   :  { %242 = vmatprep.subr.bf16.mxu0 %v241_v18 }
  0x3e   :  { %244 = vmatpush3.bf16.msra.mxu0 %v241_v18 }
  0x3f   :  { %246 = vmatprep.subr.bf16.mxu0 %v245_v21 }
  0x42   :  { %248 = vmatpush3.bf16.msra.mxu0 %v245_v21 }
  0x43   :  { %250 = vmatprep.subr.bf16.mxu0 %v249_v24 }
  0x46   :  { %252 = vmatpush3.bf16.msra.mxu0 %v249_v24 }
  0x49   :  { %219 = vmatmul.mubr.f32.vlgmr.msra.gmra.mrb[0].mxu0 %v44_v25 }
 0x11c   :  { %v220_v26 = vpop.f32.mrb[0].mxu0 }
 0x11d   :  { %v137_v28 = vadd.f32 %v220_v26, %v44_v25  ;;  %v127_v29 = vpop.f32.mrb[1].mxu0 }
 0x11e   :  { %v136_v30 = vadd.f32 %v127_v29, %v43_v9 }
 0x11f   :  { %v146_v31 = vadd.f32 %v167_v27, %v137_v28 }
 0x120   :  { %v145_v32 = vadd.f32 %v167_v27, %v136_v30 }
 0x121   :  { %148 = vst [vmem:[#allocation7 + $0x8] sm:$0xff] %v146_v31 }
 0x122   :  { %147 = vst [vmem:[#allocation7] sm:$0xff] %v145_v32 }
 0x123   :  { %313 = shalt.err (!%p310_p6)
}
 0x124   :  { %s314_s2 = scalar_lea.hbm %s406_s3, 256 }
 0x125   :  { %p315_p7 = scmp.ne.s32.totalorder %s406_s3, %s314_s2  ;;  %p318_p8 = scmp.lt.u32.totalorder %s314_s2, %s406_s3 }
 0x127   :  { %p320_p9 = pnand %p318_p8, %p315_p7 }
 0x129   :  { %323 = shalt.err (!%p320_p9)
}
 0x12a   :  { %160 = dma.vmem_to_hbm [thread:$0]  %s155_s12, 256, %s406_s3, [#allocation4], %s331_s22, %s331_s22, %s332_s23  }
 0x12b   :  { %328 = dma.done.wait [#allocation4], 256  }
 0x12c   :  { %329 = vsyncadd [#allocation4], 4294967040 }
 0x12d   :  { %164 = vsyncpa [#allocation3], 1 }
 0x12e   :  { %165 = vsyncpa [#allocation6], 1 }
 0x12f   :  { %166 = vsyncpa [#allocation4], 1 }

</bundles_post_ra>
